<compile_context>
chip_gen: v5e
topology: v5e:2x2
jax: 0.10.0
libtpu: 0.0.40
codegen_flags: <defaults>
</compile_context>

<pallas_src>
import functools

import jax
import jax.numpy as jnp
from jax.experimental import pallas as pl
from jax.experimental.pallas import tpu as pltpu


def _round_up(x, m):
    return (x + m - 1) // m * m


def _scatter_kernel(dst_ref, feat_ref, out_ref, acc_ref, *, reduce):
    ni = pl.program_id(0)          # node-tile index  (parallel)
    ei = pl.program_id(1)          # edge-tile index  (reduction)

    @pl.when(ei == 0)
    def _():
        acc_ref[...] = jnp.zeros_like(acc_ref)

    tile_n = acc_ref.shape[0]
    tile_e = dst_ref.shape[1]

    dst = dst_ref[...]                                              # [1, TILE_E]
    node_ids = ni * tile_n + jax.lax.broadcasted_iota(
        jnp.int32, (tile_n, tile_e), 0)                             # [TILE_N, TILE_E]
    onehot = (node_ids == dst).astype(jnp.float32)                  # padded edges (dst = -1) match nothing

    # MXU: accumulate [sum(edge_attrs), edge_count] for every node in this tile.
    acc_ref[...] += jnp.dot(onehot, feat_ref[...],
                            preferred_element_type=jnp.float32)

    @pl.when(ei == pl.num_programs(1) - 1)
    def _():
        d = out_ref.shape[1]
        summed = acc_ref[:, :d]
        if reduce == "mean":
            cnt = acc_ref[:, d:d + 1]
            # torch_scatter mean: nodes with no incoming edges get zeros.
            out_ref[...] = (summed / jnp.maximum(cnt, 1.0)).astype(out_ref.dtype)
        else:
            out_ref[...] = summed.astype(out_ref.dtype)


def node_attrs_from_edge_attrs(edge_attrs, edge_index, num_nodes, *,
                               reduce="mean", tile_n_max=1024, tile_e_max=512):
    """Scatter edge attributes onto destination nodes (reduce = 'mean' or 'sum').

    Args:
      edge_attrs: float [E, D] edge attributes.
      edge_index: int [2, E]; row 1 is edge_dst (scatter target).
      num_nodes:  number of nodes (dim_size == len(data[NODE_ATTRS])).
    Returns:
      float32 [num_nodes, D] reduced node attributes.
    """
    assert reduce in ("mean", "sum")
    e, d = edge_attrs.shape
    edge_dst = edge_index[1].astype(jnp.int32)

    d_aug = d + 1  # extra ones-column accumulates the per-node edge count

    tile_n = min(tile_n_max, _round_up(num_nodes, 8))
    n_pad = _round_up(num_nodes, tile_n)

    tile_e = min(tile_e_max, _round_up(e, 128))
    e_pad = _round_up(e, tile_e)

    # Edge features augmented with a ones column; padded edges are zeroed and
    # get dst = -1, so they contribute neither to the sum nor to the count.
    feat = jnp.concatenate(
        [edge_attrs.astype(jnp.float32), jnp.ones((e, 1), jnp.float32)], axis=1)
    feat = jnp.pad(feat, ((0, e_pad - e), (0, 0)))
    dst = jnp.pad(edge_dst, (0, e_pad - e), constant_values=-1).reshape(1, e_pad)

    grid = (n_pad // tile_n, e_pad // tile_e)

    cost = pl.CostEstimate(
        flops=2 * n_pad * e_pad * d_aug,
        transcendentals=0,
        bytes_accessed=e_pad * 4 + e_pad * d_aug * 4 + n_pad * d * 4,
    )

    # TODO(synk): for very small D the final [TILE_N, D] store is lane-sparse;
    # it is only issued once per node tile so packing multiple nodes per 128-lane
    # output row was not worth the extra block-diagonal plumbing here.
    out = pl.pallas_call(
        functools.partial(_scatter_kernel, reduce=reduce),
        out_shape=jax.ShapeDtypeStruct((n_pad, d), jnp.float32),
        grid_spec=pltpu.PrefetchScalarGridSpec(
            num_scalar_prefetch=0,
            grid=grid,
            in_specs=[
                pl.BlockSpec((1, tile_e), lambda ni, ei: (0, ei)),       # edge_dst
                pl.BlockSpec((tile_e, d_aug), lambda ni, ei: (ei, 0)),   # edge feats (+ ones)
            ],
            out_specs=pl.BlockSpec((tile_n, d), lambda ni, ei: (ni, 0)),
            scratch_shapes=[pltpu.VMEM((tile_n, d_aug), jnp.float32)],
        ),
        compiler_params=pltpu.CompilerParams(
            dimension_semantics=("parallel", "arbitrary")),
        cost_estimate=cost,
    )(dst, feat)

    return out[:num_nodes]


if __name__ == "__main__":
    key = jax.random.PRNGKey(0)
    k_attr, k_src, k_dst, k_node = jax.random.split(key, 4)

    num_nodes = 12
    num_edges = 40
    edge_attr_dim = 16      # e.g. spherical-harmonic edge attributes

    edge_attrs = jax.random.normal(k_attr, (num_edges, edge_attr_dim), jnp.float32)
    edge_src = jax.random.randint(k_src, (num_edges,), 0, num_nodes, dtype=jnp.int32)
    edge_dst = jax.random.randint(k_dst, (num_edges,), 0, num_nodes, dtype=jnp.int32)
    edge_index = jnp.stack([edge_src, edge_dst], axis=0)

    # Existing node attrs only define dim_size = len(data[NODE_ATTRS]).
    data = {
        "edge_attrs": edge_attrs,
        "edge_index": edge_index,
        "node_attrs": jax.random.normal(k_node, (num_nodes, 4), jnp.float32),
    }

    for reduce in ("mean", "sum"):
        x = node_attrs_from_edge_attrs(
            data["edge_attrs"], data["edge_index"], len(data["node_attrs"]),
            reduce=reduce)
        jax.block_until_ready(x)

        # Plain-JAX reference with torch_scatter semantics.
        ref_sum = jnp.zeros((num_nodes, edge_attr_dim), jnp.float32).at[edge_dst].add(edge_attrs)
        cnt = jnp.zeros((num_nodes,), jnp.float32).at[edge_dst].add(1.0)
        ref = ref_sum / jnp.maximum(cnt, 1.0)[:, None] if reduce == "mean" else ref_sum

        assert x.shape == (num_nodes, edge_attr_dim)
        assert jnp.allclose(x, ref, atol=1e-5), reduce

    # Module behaviour: write the result into data[out_field] (default NODE_ATTRS).
    data["node_attrs"] = node_attrs_from_edge_attrs(
        data["edge_attrs"], data["edge_index"], num_nodes, reduce="mean")
    jax.block_until_ready(data["node_attrs"])
    print("KERNEL_OK")
</pallas_src>

<mosaic_0001>
module attributes {stable_mosaic.version = 11 : i64} {
  func.func @_scatter_kernel(%arg0: i32, %arg1: i32, %arg2: memref<1x128xi32, #tpu.memory_space<vmem>>, %arg3: memref<128x17xf32, #tpu.memory_space<vmem>>, %arg4: memref<16x16xf32, #tpu.memory_space<vmem>>, %arg5: memref<16x17xf32, #tpu.memory_space<vmem>>) attributes {dimension_semantics = [#tpu.dimension_semantics<parallel>, #tpu.dimension_semantics<arbitrary>], iteration_bounds = array<i64: 1, 1>, scalar_prefetch = 0 : i64, scratch_operands = 1 : i64, tpu.core_type = #tpu.core_type<tc>, window_params = [{transform_indices = @transform_0, window_bounds = array<i64: 1, 128>}, {transform_indices = @transform_1, window_bounds = array<i64: 128, 17>}, {transform_indices = @transform_2, window_bounds = array<i64: 16, 16>}]} {
    %c0_i32 = arith.constant 0 : i32
    %0 = arith.cmpi eq, %arg1, %c0_i32 : i32
    %1 = arith.extui %0 : i1 to i32
    %c0_i32_0 = arith.constant 0 : i32
    %2 = arith.cmpi ne, %1, %c0_i32_0 : i32
    scf.if %2 {
      %cst_10 = arith.constant 0.000000e+00 : f32
      %20 = vector.broadcast %cst_10 : f32 to vector<16x17xf32>
      %c0_11 = arith.constant 0 : index
      %c0_12 = arith.constant 0 : index
      %21 = vector.load %arg5[%c0_11, %c0_12] : memref<16x17xf32, #tpu.memory_space<vmem>>, vector<16x17xf32>
      tpu.vector_store %arg5[%c0_11, %c0_12], %20 {strides = array<i32>} : memref<16x17xf32, #tpu.memory_space<vmem>>, vector<16x17xf32>,
    } else {
    }
    %c0 = arith.constant 0 : index
    %c0_1 = arith.constant 0 : index
    %3 = vector.load %arg2[%c0, %c0_1] : memref<1x128xi32, #tpu.memory_space<vmem>>, vector<1x128xi32>
    %c16_i32 = arith.constant 16 : i32
    %4 = arith.muli %arg0, %c16_i32 : i32
    %5 = tpu.iota {dimensions = array<i32: 0>} : vector<16x128xi32>
    %6 = vector.broadcast %4 : i32 to vector<16x128xi32>
    %7 = arith.addi %6, %5 : vector<16x128xi32>
    %8 = vector.broadcast %3 : vector<1x128xi32> to vector<16x128xi32>
    %9 = arith.cmpi eq, %7, %8 : vector<16x128xi32>
    %10 = arith.extui %9 : vector<16x128xi1> to vector<16x128xi32>
    %11 = arith.sitofp %10 : vector<16x128xi32> to vector<16x128xf32>
    %c0_2 = arith.constant 0 : index
    %c0_3 = arith.constant 0 : index
    %12 = vector.load %arg5[%c0_2, %c0_3] : memref<16x17xf32, #tpu.memory_space<vmem>>, vector<16x17xf32>
    %c0_4 = arith.constant 0 : index
    %c0_5 = arith.constant 0 : index
    %13 = vector.load %arg3[%c0_4, %c0_5] : memref<128x17xf32, #tpu.memory_space<vmem>>, vector<128x17xf32>
    %cst = arith.constant dense<0.000000e+00> : vector<16x17xf32>
    %14 = tpu.matmul %11, %13, %cst {dimension_numbers = #tpu.dot_dimension_numbers<[1], [0], [0], [1], [0, 0, 1, 1], [], []>} : vector<16x128xf32>, vector<128x17xf32>, vector<16x17xf32> -> vector<16x17xf32>
    %15 = arith.addf %12, %14 : vector<16x17xf32>
    %c0_6 = arith.constant 0 : index
    %c0_7 = arith.constant 0 : index
    %16 = vector.load %arg5[%c0_6, %c0_7] : memref<16x17xf32, #tpu.memory_space<vmem>>, vector<16x17xf32>
    tpu.vector_store %arg5[%c0_6, %c0_7], %15 {strides = array<i32>} : memref<16x17xf32, #tpu.memory_space<vmem>>, vector<16x17xf32>,
    %c0_i32_8 = arith.constant 0 : i32
    %17 = arith.cmpi eq, %arg1, %c0_i32_8 : i32
    %18 = arith.extui %17 : i1 to i32
    %c0_i32_9 = arith.constant 0 : i32
    %19 = arith.cmpi ne, %18, %c0_i32_9 : i32
    scf.if %19 {
      %c0_10 = arith.constant 0 : index
      %c0_11 = arith.constant 0 : index
      %20 = vector.load %arg5[%c0_10, %c0_11] : memref<16x17xf32, #tpu.memory_space<vmem>>, vector<16x16xf32>
      %c0_12 = arith.constant 0 : index
      %c16 = arith.constant 16 : index
      %21 = vector.load %arg5[%c0_12, %c16] : memref<16x17xf32, #tpu.memory_space<vmem>>, vector<16x1xf32>
      %cst_13 = arith.constant 1.000000e+00 : f32
      %22 = vector.broadcast %cst_13 : f32 to vector<16x1xf32>
      %23 = arith.maximumf %21, %22 : vector<16x1xf32>
      %24 = vector.broadcast %23 : vector<16x1xf32> to vector<16x16xf32>
      %25 = arith.divf %20, %24 : vector<16x16xf32>
      %c0_14 = arith.constant 0 : index
      %c0_15 = arith.constant 0 : index
      %26 = vector.load %arg4[%c0_14, %c0_15] : memref<16x16xf32, #tpu.memory_space<vmem>>, vector<16x16xf32>
      tpu.vector_store %arg4[%c0_14, %c0_15], %25 {strides = array<i32>} : memref<16x16xf32, #tpu.memory_space<vmem>>, vector<16x16xf32>,
    } else {
    }
    return
  }
  func.func @transform_0(%arg0: i32, %arg1: i32) -> (i32, i32) {
    %c0_i32 = arith.constant 0 : i32
    %c0_i32_0 = arith.constant 0 : i32
    return %c0_i32, %arg1 : i32, i32
  }
  func.func @transform_1(%arg0: i32, %arg1: i32) -> (i32, i32) {
    %c0_i32 = arith.constant 0 : i32
    %c0_i32_0 = arith.constant 0 : i32
    return %arg1, %c0_i32 : i32, i32
  }
  func.func @transform_2(%arg0: i32, %arg1: i32) -> (i32, i32) {
    %c0_i32 = arith.constant 0 : i32
    %c0_i32_0 = arith.constant 0 : i32
    return %arg0, %c0_i32 : i32, i32
  }
}

</mosaic_0001>

<bundles_post_ra>
// kernel: tpu_custom_call.1
= control target key start
LH: loop header
LB: loop body
LE: loop exit
PB: predicated region body
PF: predicated region fallthrough
CT: control target
= control target key end

     0   :  { %vm16_vm0 = vcmask 138240   ;;  %v206_v2 = vmov 0.0   ;;  %s287_s0 = inlined_call_operand.vmem [shape: s32[1,128], index: 0, kind: input, shape index: {}]   ;;  %s288_s1 = inlined_call_operand.vmem [shape: f32[128,17], index: 1, kind: input, shape index: {}]   ;;  %s289_s2 = inlined_call_operand.hbm [shape: f32[16,16], index: 2, kind: output, shape index: {}]  }
   0x1   :  { %v51_v0 = vld [vmem:[%s288_s1 + $0x78] sm:$0xff]  ;;  %v50_v1 = vld [vmem:[%s288_s1 + $0x70] sm:$0xff]  ;;  %17 = vst.msk [vmem:[#allocation2] sm:$0xff] %vm16_vm0, %v206_v2  ;;  %v49_v3 = vld [vmem:[%s288_s1 + $0x68] sm:$0xff] }
   0x2   :  { %52 = vmatpush.msra.mxu0 %v51_v0  ;;  %152 = vmatpush.msra.mxu1 %v51_v0  ;;  %18 = vst.msk [vmem:[#allocation2 + $0x8] sm:$0xff] %vm16_vm0, %v206_v2  ;;  %v48_v4 = vld [vmem:[%s288_s1 + $0x60] sm:$0xff]  ;;  %v47_v5 = vld [vmem:[%s288_s1 + $0x58] sm:$0xff] }
   0x4   :  { %53 = vmatpush.msra.mxu0 %v50_v1  ;;  %153 = vmatpush.msra.mxu1 %v50_v1 }
   0x6   :  { %54 = vmatpush.msra.mxu0 %v49_v3  ;;  %154 = vmatpush.msra.mxu1 %v49_v3 }
   0x7   :  { %7 = vsyncpa [#allocation4], 0  ;;  %v46_v6 = vld [vmem:[%s288_s1 + $0x50] sm:$0xff]  ;;  %v45_v7 = vld [vmem:[%s288_s1 + $0x48] sm:$0xff]  ;;  %v21_v12 = vlaneseq  ;;  %v207_v21 = vmov 1.0   ;;  %v208_v22 = vmov 16  }
   0x8   :  { %55 = vmatpush.msra.mxu0 %v48_v4  ;;  %155 = vmatpush.msra.mxu1 %v48_v4  ;;  %v44_v8 = vld [vmem:[%s288_s1 + $0x40] sm:$0xff]  ;;  %v43_v9 = vld [vmem:[%s288_s1 + $0x38] sm:$0xff]  ;;  %v42_v10 = vld [vmem:[%s288_s1 + $0x30] sm:$0xff]  ;;  %vm127_vm7 = vcmask 130048   ;;  %s136_s17 = sshll.u32 %s289_s2, 4  ;;  %s210_s18 = smov 128   ;;  %s137_s17 = int_to_ptr.hbm [resolvable:$true] %s136_s17 }
   0x9   :  { %v41_v11 = vld [vmem:[%s288_s1 + $0x28] sm:$0xff]  ;;  %v40_v13 = vld [vmem:[%s288_s1 + $0x20] sm:$0xff]  ;;  %v39_v14 = vld [vmem:[%s288_s1 + $0x18] sm:$0xff]  ;;  %v22_v15 = vshrl.u32 %v21_v12, 7  ;;  %174 = vset.pattern.permute.xlu0 %v208_v22  ;;  %s211_s19 = smov 8  }
   0xa   :  { %56 = vmatpush.msra.mxu0 %v47_v5  ;;  %156 = vmatpush.msra.mxu1 %v47_v5  ;;  %v38_v16 = vld [vmem:[%s288_s1 + $0x10] sm:$0xff]  ;;  %v175_v17 = vld [vmem:[%s287_s0] ss:$0 sm:$0xff]  ;;  %v37_v19 = vld [vmem:[%s288_s1 + $0x8] sm:$0xff]  ;;  %s209_s0 = smov [#allocation3]  }
   0xb   :  { %v23_v18 = vadd.s32 8, %v22_v15  ;;  %v36_v20 = vld [vmem:[%s288_s1] sm:$0xff]  ;;  %vm28_vm1 = vcmp.eq.s32.totalorder %v22_v15, %v175_v17  ;;  %v35_v24 = vld [vmem:[#allocation2 + $0x8] sm:$0xff]  ;;  %s134_s1 = sshll.u32 %s209_s0, 4  ;;  %s135_s1 = int_to_ptr.vmem [resolvable:$true] %s134_s1 }
   0xc   :  { %57 = vmatpush.msra.mxu0 %v46_v6  ;;  %157 = vmatpush.msra.mxu1 %v46_v6  ;;  %v34_v23 = vld [vmem:[#allocation2] sm:$0xff] }
   0xd   :  { %vm29_vm2 = vcmp.eq.s32.totalorder %v23_v18, %v175_v17 }
   0xe   :  { %58 = vmatpush.msra.mxu0 %v45_v7  ;;  %158 = vmatpush.msra.mxu1 %v45_v7 }
  0x10   :  { %59 = vmatpush.msra.mxu0 %v44_v8  ;;  %159 = vmatpush.msra.mxu1 %v44_v8 }
  0x12   :  { %60 = vmatpush.msra.mxu0 %v43_v9  ;;  %160 = vmatpush.msra.mxu1 %v43_v9 }
  0x14   :  { %61 = vmatpush.msra.mxu0 %v42_v10  ;;  %161 = vmatpush.msra.mxu1 %v42_v10 }
  0x16   :  { %62 = vmatpush.msra.mxu0 %v41_v11  ;;  %162 = vmatpush.msra.mxu1 %v41_v11 }
  0x18   :  { %63 = vmatpush.msra.mxu0 %v40_v13  ;;  %163 = vmatpush.msra.mxu1 %v40_v13 }
  0x1a   :  { %64 = vmatpush.msra.mxu0 %v39_v14  ;;  %164 = vmatpush.msra.mxu1 %v39_v14 }
  0x1c   :  { %65 = vmatpush.msra.mxu0 %v38_v16  ;;  %165 = vmatpush.msra.mxu1 %v38_v16 }
  0x1e   :  { %66 = vmatpush.msra.mxu0 %v37_v19  ;;  %166 = vmatpush.msra.mxu1 %v37_v19 }
  0x20   :  { %67 = vmatpush.msra.mxu0 %v36_v20  ;;  %167 = vmatpush.msra.mxu1 %v36_v20 }
  0x21   :  { %150 = vmatmul.msk.f32.vlgmr.msra.gmra.mxu0 %vm28_vm1, %v207_v21  ;;  %151 = vmatmul.msk.f32.vlgmr.msra.gmra.mxu1 %vm29_vm2, %v207_v21 }
  0x9e   :  { %v69_v25 = vpop.f32.mrf.mxu0  ;;  %v72_v26 = vpop.f32.mrf.mxu1 }
  0x9f   :  { %v75_v27 = vadd.f32 %v69_v25, %v34_v23  ;;  %v76_v28 = vadd.f32 %v72_v26, %v35_v24 }
  0xa1   :  { %78 = vst.msk [vmem:[#allocation2] sm:$0xff] %vm16_vm0, %v75_v27 }
  0xa2   :  { %79 = vst.msk [vmem:[#allocation2 + $0x8] sm:$0xff] %vm16_vm0, %v76_v28 }
  0xa8   :  { %v83_v29 = vld [vmem:[#allocation2] sm:$0xff] }
  0xa9   :  { %v85_v30 = vmax.f32 %v83_v29, 1.0  ;;  %v84_v31 = vld [vmem:[#allocation2 + $0x8] sm:$0xff] }
  0xaa   :  { %v86_v32 = vmax.f32 %v84_v31, 1.0 }
  0xab   :  { %89 = vperm.xlu0 %174, %v85_v30  }
  0xb3   :  { %94 = vperm.xlu0 %174, %v86_v32  }
 0x11d   :  { %v90_v33 = vpop.permute.xlu0 %89 }
 0x11e   :  { %176 = vrcp.f32 %v90_v33  ;;  %v108_v38 = vand.u32 2147483648, %v90_v33  ;;  %v106_v40 = vand.u32 2147483647, %v90_v33  ;;  %vm102_vm4 = vweird.f32 %v90_v33 }
 0x120   :  { %v109_v43 = vor.u32 1.1754944e-38, %v108_v38  ;;  %vm107_vm6 = vcmp.eq.f32.partialorder %v106_v40, 8.507059e+37 }
 0x124   :  { %v177_v34 = vpop.eup %176 }
 0x125   :  { %v98_v35 = vmul.f32 %v177_v34, %v90_v33  ;;  %v95_v36 = vpop.permute.xlu0 %94  ;;  %vm103_vm3 = vweird.f32 %v177_v34 }
 0x126   :  { %178 = vrcp.f32 %v95_v36  ;;  %vm104_vm5 = vmor %vm102_vm4, %vm103_vm3  ;;  %v123_v49 = vand.u32 2147483648, %v95_v36  ;;  %v121_v51 = vand.u32 2147483647, %v95_v36  ;;  %vm117_vm9 = vweird.f32 %v95_v36 }
 0x127   :  { %v99_v37 = vsub.f32 1.0, %v98_v35 }
 0x128   :  { %v124_v53 = vor.u32 1.1754944e-38, %v123_v49  ;;  %vm122_vm11 = vcmp.eq.f32.partialorder %v121_v51, 8.507059e+37 }
 0x129   :  { %v100_v39 = vmul.f32 %v177_v34, %v99_v37 }
 0x12b   :  { %v101_v41 = vadd.f32 %v177_v34, %v100_v39 }
 0x12c   :  { %v179_v42 = vpop.eup %178 }
 0x12d   :  { %v105_v44 = vsel %vm104_vm5, %v177_v34, %v101_v41  ;;  %v113_v45 = vmul.f32 %v179_v42, %v95_v36  ;;  %vm118_vm8 = vweird.f32 %v179_v42 }
 0x12e   :  { %v110_v46 = vsel %vm107_vm6, %v109_v43, %v105_v44  ;;  %vm119_vm10 = vmor %vm117_vm9, %vm118_vm8 }
 0x12f   :  { %v111_v47 = vmul.f32 %v110_v46, %v83_v29  ;;  %v114_v48 = vsub.f32 1.0, %v113_v45 }
 0x131   :  { %v115_v50 = vmul.f32 %v179_v42, %v114_v48  ;;  %128 = vst.msk [vmem:[#allocation3] sm:$0xff] %vm127_vm7, %v111_v47 }
 0x133   :  { %v116_v52 = vadd.f32 %v179_v42, %v115_v50 }
 0x135   :  { %v120_v54 = vsel %vm119_vm10, %v179_v42, %v116_v52 }
 0x136   :  { %v125_v55 = vsel %vm122_vm11, %v124_v53, %v120_v54 }
 0x137   :  { %v126_v56 = vmul.f32 %v125_v55, %v84_v31 }
 0x139   :  { %129 = vst.msk [vmem:[#allocation3 + $0x8] sm:$0xff] %vm127_vm7, %v126_v56 }
 0x13a   :  { %142 = dma.vmem_to_hbm [thread:$0]  %s135_s1, 256, %s137_s17, [#allocation4], %s210_s18, %s210_s18, %s211_s19  }
 0x13b   :  { %204 = dma.done.wait [#allocation4], 256  }
 0x13c   :  { %205 = vsyncadd [#allocation4], 4294967040 }
 0x13d   :  { %147 = vsyncpa [#allocation4], 1 }

</bundles_post_ra>
